<compile_context>
chip_gen: v6e
topology: v6e:2x2x1
jax: 0.10.0
libtpu: 0.0.40
codegen_flags: <defaults>
</compile_context>

<pallas_src>
import functools

import jax
import jax.numpy as jnp
from jax.experimental import pallas as pl
from jax.experimental.pallas import tpu as pltpu

K_IN = 784          # input features (first matmul runs K=784 directly)
H1 = 128
H2 = 256
N_OUT = 10
N_PAD = 128         # lane-dense padded output width
DEFAULT_TB = 1024   # batch tile (sweepable; ~7 MiB VMEM at 1024)


def _round_up(n, m):
    return ((n + m - 1) // m) * m


def _cdiv(a, b):
    return (a + b - 1) // b


def mlp_kernel(x_ref, w1_ref, b1_ref, w2_ref, b2_ref, w3_ref, b3_ref, o_ref):
    """Fused 3-layer MLP forward for one batch tile.

    x_ref: (TB, 784) f32 (cast to bf16 in-kernel)
    w*:    bf16, stored (in, out); w1 (784,128), w2 (128,256), w3 (256,128 padded)
    b*:    f32 (1, out) (b3 padded to 128)
    o_ref: (TB, 128) bf16 (padded logits; cols 10..127 come from zero weights)
    """
    x = x_ref[...].astype(jnp.bfloat16)   # in-kernel cast, no HBM bf16 copy
    b1 = b1_ref[...]
    b2 = b2_ref[...]
    b3 = b3_ref[...]

    # hidden1: (TB,784) @ (784,128) -> f32 acc, + bias, relu
    h1 = jnp.dot(x, w1_ref[...], preferred_element_type=jnp.float32) + b1
    h1 = jnp.maximum(h1, 0.0).astype(jnp.bfloat16)
    # dropout(p=0.5): identity in eval mode

    # hidden2: (TB,128) @ (128,256) -> f32 acc, + bias, relu
    h2 = jnp.dot(h1, w2_ref[...], preferred_element_type=jnp.float32) + b2
    h2 = jnp.maximum(h2, 0.0).astype(jnp.bfloat16)
    # dropout(p=0.5): identity in eval mode

    # out: (TB,256) @ (256,128 padded) -> f32, bf16 lane-dense full-width store
    logits = jnp.dot(h2, w3_ref[...], preferred_element_type=jnp.float32) + b3
    o_ref[...] = logits.astype(o_ref.dtype)


@functools.partial(jax.jit, static_argnames=("block_b",))
def mnist_nn_forward(x, params, block_b=DEFAULT_TB):
    """x: (B, 784) f32. Returns (B, 10) f32 logits."""
    w1, b1, w2, b2, w3, b3 = params
    B = x.shape[0]

    # Split the batch as evenly as possible into tiles of <= block_b rows
    # (multiple of 8). Keep >= 2 grid steps when possible so the "parallel"
    # grid axis can shard across v7x's two TensorCores.
    num_tiles = max(1, _cdiv(B, block_b))
    if B >= 16:
        num_tiles = max(num_tiles, 2)
    tb = _round_up(_cdiv(B, num_tiles), 8)
    b_pad = tb * num_tiles

    # Only batch-pad (rows) when needed; no feature padding, no dtype copy.
    x_in = x if b_pad == B else jnp.pad(x, ((0, b_pad - B), (0, 0)))

    grid = (num_tiles,)

    flops = 2 * b_pad * (K_IN * H1 + H1 * H2 + H2 * N_PAD)
    bytes_accessed = (
        b_pad * K_IN * 4                                  # x (f32)
        + (K_IN * H1 + H1 * H2 + H2 * N_PAD) * 2          # weights (bf16)
        + (H1 + H2 + N_PAD) * 4                           # biases (f32)
        + b_pad * N_PAD * 2                               # output (bf16)
    )

    out_padded = pl.pallas_call(
        mlp_kernel,
        out_shape=jax.ShapeDtypeStruct((b_pad, N_PAD), jnp.bfloat16),
        grid_spec=pltpu.PrefetchScalarGridSpec(
            num_scalar_prefetch=0,
            grid=grid,
            in_specs=[
                # x streams through VMEM; last block dim == full array dim (784)
                pl.BlockSpec((tb, K_IN), lambda i: (i, 0)),
                pl.BlockSpec((K_IN, H1), lambda i: (0, 0)),   # w1: resident
                pl.BlockSpec((1, H1), lambda i: (0, 0)),      # b1
                pl.BlockSpec((H1, H2), lambda i: (0, 0)),     # w2
                pl.BlockSpec((1, H2), lambda i: (0, 0)),      # b2
                pl.BlockSpec((H2, N_PAD), lambda i: (0, 0)),  # w3 (padded)
                pl.BlockSpec((1, N_PAD), lambda i: (0, 0)),   # b3 (padded)
            ],
            out_specs=pl.BlockSpec((tb, N_PAD), lambda i: (i, 0)),
        ),
        compiler_params=pltpu.CompilerParams(
            dimension_semantics=("parallel",),   # 2-TC split on v7x
            vmem_limit_bytes=32 * 1024 * 1024,   # headroom for larger tb sweeps
        ),
        cost_estimate=pl.CostEstimate(
            flops=flops, transcendentals=0, bytes_accessed=bytes_accessed
        ),
    )(x_in, w1, b1, w2, b2, w3, b3)

    # strip batch padding and lane padding; return f32 logits
    return out_padded[:B, :N_OUT].astype(jnp.float32)


def init_params(key):
    """torch.nn.Linear-style init (U(-1/sqrt(fan_in), +)); weights stored
    transposed as (in, out), bf16; only w3/b3 are lane-padded (10 -> 128)."""
    def linear(key, fan_in, fan_out):
        kw, kb = jax.random.split(key)
        bound = 1.0 / jnp.sqrt(jnp.float32(fan_in))
        w = jax.random.uniform(kw, (fan_in, fan_out), jnp.float32, -bound, bound)
        b = jax.random.uniform(kb, (1, fan_out), jnp.float32, -bound, bound)
        return w, b

    k1, k2, k3 = jax.random.split(key, 3)
    w1, b1 = linear(k1, K_IN, H1)
    w2, b2 = linear(k2, H1, H2)
    w3, b3 = linear(k3, H2, N_OUT)

    # lane-dense padding of the final layer only: N 10 -> 128 (zero cols/entries)
    w3 = jnp.pad(w3, ((0, 0), (0, N_PAD - N_OUT)))
    b3 = jnp.pad(b3, ((0, 0), (0, N_PAD - N_OUT)))

    # bf16 weights for the MXU; biases stay f32 (added after f32 accumulation)
    return (
        w1.astype(jnp.bfloat16), b1,
        w2.astype(jnp.bfloat16), b2,
        w3.astype(jnp.bfloat16), b3,
    )


if __name__ == "__main__":
    key = jax.random.PRNGKey(0)
    kx, kp = jax.random.split(key)

    B = 8  # small demo batch (wrapper pads rows to a multiple of 8 if needed)
    x = jax.random.normal(kx, (B, K_IN), jnp.float32)
    params = init_params(kp)

    out = mnist_nn_forward(x, params)
    out = jax.block_until_ready(out)
    assert out.shape == (B, N_OUT)

    # reference with the same bf16 quantization of inputs/weights/activations
    w1, b1, w2, b2, w3, b3 = params
    xr = x.astype(jnp.bfloat16).astype(jnp.float32)
    r = jnp.maximum(xr @ w1.astype(jnp.float32) + b1, 0.0)
    r = r.astype(jnp.bfloat16).astype(jnp.float32)
    r = jnp.maximum(r @ w2.astype(jnp.float32) + b2, 0.0)
    r = r.astype(jnp.bfloat16).astype(jnp.float32)
    r = r @ w3.astype(jnp.float32) + b3
    ref = r[:, :N_OUT].astype(jnp.bfloat16).astype(jnp.float32)  # bf16 out store

    assert jnp.allclose(out, ref, atol=2e-2, rtol=2e-2), (
        float(jnp.max(jnp.abs(out - ref)))
    )

    print("KERNEL_OK")
</pallas_src>

<mosaic_0001>
module attributes {stable_mosaic.version = 11 : i64} {
  func.func @mlp_kernel(%arg0: i32, %arg1: memref<8x784xf32, #tpu.memory_space<vmem>>, %arg2: memref<784x128xbf16, #tpu.memory_space<vmem>>, %arg3: memref<1x128xf32, #tpu.memory_space<vmem>>, %arg4: memref<128x256xbf16, #tpu.memory_space<vmem>>, %arg5: memref<1x256xf32, #tpu.memory_space<vmem>>, %arg6: memref<256x128xbf16, #tpu.memory_space<vmem>>, %arg7: memref<1x128xf32, #tpu.memory_space<vmem>>, %arg8: memref<8x128xbf16, #tpu.memory_space<vmem>>) attributes {dimension_semantics = [#tpu.dimension_semantics<parallel>], iteration_bounds = array<i64: 1>, scalar_prefetch = 0 : i64, scratch_operands = 0 : i64, tpu.core_type = #tpu.core_type<tc>, window_params = [{transform_indices = @transform_0, window_bounds = array<i64: 8, 784>}, {pipeline_mode = #tpu.pipeline_mode<synchronous>, transform_indices = @transform_1, window_bounds = array<i64: 784, 128>}, {pipeline_mode = #tpu.pipeline_mode<synchronous>, transform_indices = @transform_2, window_bounds = array<i64: 1, 128>}, {pipeline_mode = #tpu.pipeline_mode<synchronous>, transform_indices = @transform_3, window_bounds = array<i64: 128, 256>}, {pipeline_mode = #tpu.pipeline_mode<synchronous>, transform_indices = @transform_4, window_bounds = array<i64: 1, 256>}, {pipeline_mode = #tpu.pipeline_mode<synchronous>, transform_indices = @transform_5, window_bounds = array<i64: 256, 128>}, {pipeline_mode = #tpu.pipeline_mode<synchronous>, transform_indices = @transform_6, window_bounds = array<i64: 1, 128>}, {transform_indices = @transform_7, window_bounds = array<i64: 8, 128>}]} {
    %c0 = arith.constant 0 : index
    %c0_0 = arith.constant 0 : index
    %0 = vector.load %arg1[%c0, %c0_0] : memref<8x784xf32, #tpu.memory_space<vmem>>, vector<8x784xf32>
    %1 = arith.truncf %0 : vector<8x784xf32> to vector<8x784xbf16>
    %c0_1 = arith.constant 0 : index
    %c0_2 = arith.constant 0 : index
    %2 = vector.load %arg3[%c0_1, %c0_2] : memref<1x128xf32, #tpu.memory_space<vmem>>, vector<1x128xf32>
    %c0_3 = arith.constant 0 : index
    %c0_4 = arith.constant 0 : index
    %3 = vector.load %arg5[%c0_3, %c0_4] : memref<1x256xf32, #tpu.memory_space<vmem>>, vector<1x256xf32>
    %c0_5 = arith.constant 0 : index
    %c0_6 = arith.constant 0 : index
    %4 = vector.load %arg7[%c0_5, %c0_6] : memref<1x128xf32, #tpu.memory_space<vmem>>, vector<1x128xf32>
    %c0_7 = arith.constant 0 : index
    %c0_8 = arith.constant 0 : index
    %5 = vector.load %arg2[%c0_7, %c0_8] : memref<784x128xbf16, #tpu.memory_space<vmem>>, vector<784x128xbf16>
    %cst = arith.constant dense<0.000000e+00> : vector<8x128xf32>
    %6 = tpu.matmul %1, %5, %cst {dimension_numbers = #tpu.dot_dimension_numbers<[1], [0], [0], [1], [0, 0, 1, 1], [], []>} : vector<8x784xbf16>, vector<784x128xbf16>, vector<8x128xf32> -> vector<8x128xf32>
    %7 = vector.broadcast %2 : vector<1x128xf32> to vector<8x128xf32>
    %8 = arith.addf %6, %7 : vector<8x128xf32>
    %cst_9 = arith.constant 0.000000e+00 : f32
    %9 = vector.broadcast %cst_9 : f32 to vector<8x128xf32>
    %10 = arith.maximumf %8, %9 : vector<8x128xf32>
    %11 = arith.truncf %10 : vector<8x128xf32> to vector<8x128xbf16>
    %c0_10 = arith.constant 0 : index
    %c0_11 = arith.constant 0 : index
    %12 = vector.load %arg4[%c0_10, %c0_11] : memref<128x256xbf16, #tpu.memory_space<vmem>>, vector<128x256xbf16>
    %cst_12 = arith.constant dense<0.000000e+00> : vector<8x256xf32>
    %13 = tpu.matmul %11, %12, %cst_12 {dimension_numbers = #tpu.dot_dimension_numbers<[1], [0], [0], [1], [0, 0, 1, 1], [], []>} : vector<8x128xbf16>, vector<128x256xbf16>, vector<8x256xf32> -> vector<8x256xf32>
    %14 = vector.broadcast %3 : vector<1x256xf32> to vector<8x256xf32>
    %15 = arith.addf %13, %14 : vector<8x256xf32>
    %cst_13 = arith.constant 0.000000e+00 : f32
    %16 = vector.broadcast %cst_13 : f32 to vector<8x256xf32>
    %17 = arith.maximumf %15, %16 : vector<8x256xf32>
    %18 = arith.truncf %17 : vector<8x256xf32> to vector<8x256xbf16>
    %c0_14 = arith.constant 0 : index
    %c0_15 = arith.constant 0 : index
    %19 = vector.load %arg6[%c0_14, %c0_15] : memref<256x128xbf16, #tpu.memory_space<vmem>>, vector<256x128xbf16>
    %cst_16 = arith.constant dense<0.000000e+00> : vector<8x128xf32>
    %20 = tpu.matmul %18, %19, %cst_16 {dimension_numbers = #tpu.dot_dimension_numbers<[1], [0], [0], [1], [0, 0, 1, 1], [], []>} : vector<8x256xbf16>, vector<256x128xbf16>, vector<8x128xf32> -> vector<8x128xf32>
    %21 = vector.broadcast %4 : vector<1x128xf32> to vector<8x128xf32>
    %22 = arith.addf %20, %21 : vector<8x128xf32>
    %23 = arith.truncf %22 : vector<8x128xf32> to vector<8x128xbf16>
    %c0_17 = arith.constant 0 : index
    %c0_18 = arith.constant 0 : index
    %24 = vector.load %arg8[%c0_17, %c0_18] : memref<8x128xbf16, #tpu.memory_space<vmem>>, vector<8x128xbf16>
    tpu.vector_store %arg8[%c0_17, %c0_18], %23 {strides = array<i32>} : memref<8x128xbf16, #tpu.memory_space<vmem>>, vector<8x128xbf16>,
    return
  }
  func.func @transform_0(%arg0: i32) -> (i32, i32) {
    %c0_i32 = arith.constant 0 : i32
    %c0_i32_0 = arith.constant 0 : i32
    return %arg0, %c0_i32 : i32, i32
  }
  func.func @transform_1(%arg0: i32) -> (i32, i32) {
    %c0_i32 = arith.constant 0 : i32
    %c0_i32_0 = arith.constant 0 : i32
    %c0_i32_1 = arith.constant 0 : i32
    return %c0_i32, %c0_i32_0 : i32, i32
  }
  func.func @transform_2(%arg0: i32) -> (i32, i32) {
    %c0_i32 = arith.constant 0 : i32
    %c0_i32_0 = arith.constant 0 : i32
    %c0_i32_1 = arith.constant 0 : i32
    return %c0_i32, %c0_i32_0 : i32, i32
  }
  func.func @transform_3(%arg0: i32) -> (i32, i32) {
    %c0_i32 = arith.constant 0 : i32
    %c0_i32_0 = arith.constant 0 : i32
    %c0_i32_1 = arith.constant 0 : i32
    return %c0_i32, %c0_i32_0 : i32, i32
  }
  func.func @transform_4(%arg0: i32) -> (i32, i32) {
    %c0_i32 = arith.constant 0 : i32
    %c0_i32_0 = arith.constant 0 : i32
    %c0_i32_1 = arith.constant 0 : i32
    return %c0_i32, %c0_i32_0 : i32, i32
  }
  func.func @transform_5(%arg0: i32) -> (i32, i32) {
    %c0_i32 = arith.constant 0 : i32
    %c0_i32_0 = arith.constant 0 : i32
    %c0_i32_1 = arith.constant 0 : i32
    return %c0_i32, %c0_i32_0 : i32, i32
  }
  func.func @transform_6(%arg0: i32) -> (i32, i32) {
    %c0_i32 = arith.constant 0 : i32
    %c0_i32_0 = arith.constant 0 : i32
    %c0_i32_1 = arith.constant 0 : i32
    return %c0_i32, %c0_i32_0 : i32, i32
  }
  func.func @transform_7(%arg0: i32) -> (i32, i32) {
    %c0_i32 = arith.constant 0 : i32
    %c0_i32_0 = arith.constant 0 : i32
    return %arg0, %c0_i32 : i32, i32
  }
}

</mosaic_0001>

<bundles_post_ra>
// kernel: mnist_nn_forward.1
= control target key start
LH: loop header
LB: loop body
LE: loop exit
PB: predicated region body
PF: predicated region fallthrough
CT: control target
= control target key end

     0   :  { %12 = vsyncpa [#allocation3], 0  ;;  %s1443_s0 = inlined_call_operand.hbm [shape: f32[8,784], index: 0, kind: input, shape index: {}]   ;;  %s1444_s1 = inlined_call_operand.hbm [shape: bf16[784,128], index: 1, kind: input, shape index: {}]   ;;  %s1445_s2 = inlined_call_operand.vmem [shape: f32[1,128], index: 2, kind: input, shape index: {}]   ;;  %s1446_s3 = inlined_call_operand.hbm [shape: bf16[128,256], index: 3, kind: input, shape index: {}]   ;;  %s1447_s4 = inlined_call_operand.vmem [shape: f32[1,256], index: 4, kind: input, shape index: {}]   ;;  %s1448_s5 = inlined_call_operand.hbm [shape: bf16[256,128], index: 5, kind: input, shape index: {}]   ;;  %s1449_s6 = inlined_call_operand.vmem [shape: f32[1,128], index: 6, kind: input, shape index: {}]   ;;  %s1450_s7 = inlined_call_operand.vmem [shape: bf16[8,128], index: 7, kind: output, shape index: {}]  }
   0x1   :  { %13 = vsyncpa [#allocation5], 0 }
   0x2   :  { %14 = vsyncpa [#allocation8], 0  ;;  %s1362_s24 = smov [#allocation4]  }
   0x3   :  { %s30_s25 = sshll.u32 %s1362_s24, 4  ;;  %s31_s25 = int_to_ptr.vmem [resolvable:$true] %s30_s25 }
   0x4   :  { %s1284_s26 = scalar_lea.vmem %s31_s25, 6272  ;;  %p1289_p1 = scmp.lt.s32.totalorder %s31_s25, %s31_s25 }
   0x5   :  { %p1285_p0 = scmp.ne.s32.totalorder %s31_s25, %s1284_s26  ;;  %p1290_p2 = scmp.lt.s32.totalorder %s1284_s26, %s1284_s26 }
   0x7   :  { %p1291_p3 = por %p1290_p2, %p1289_p1 }
   0x9   :  { %p1292_p4 = pnand %p1291_p3, %p1285_p0 }
   0xb   :  { %1295 = shalt.err (!%p1292_p4)
}
   0xc   :  { %s1363_s27 = smov 64   ;;  %s1364_s28 = smov 4  }
   0xd   :  { %36 = dma.hbm_to_vmem [thread:$0]  %s1444_s1, 6272, %s31_s25, [#allocation5], %s1363_s27, %s1363_s27, %s1364_s28  }
   0xe   :  { %s1365_s8 = smov [#allocation2]   ;;  %s1366_s10 = smov [#allocation6]  }
   0xf   :  { %s21_s9 = sshll.u32 %s1365_s8, 4  ;;  %s44_s11 = sshll.u32 %s1366_s10, 4  ;;  %s22_s9 = int_to_ptr.vmem [resolvable:$true] %s21_s9  ;;  %s45_s11 = int_to_ptr.vmem [resolvable:$true] %s44_s11 }
  0x10   :  { %s1304_s12 = scalar_lea.vmem %s22_s9, 896  ;;  %p1309_p6 = scmp.lt.s32.totalorder %s22_s9, %s22_s9 }
  0x11   :  { %p1305_p5 = scmp.ne.s32.totalorder %s22_s9, %s1304_s12  ;;  %p1310_p7 = scmp.lt.s32.totalorder %s1304_s12, %s1304_s12 }
  0x13   :  { %p1311_p8 = por %p1310_p7, %p1309_p6 }
  0x15   :  { %p1312_p9 = pnand %p1311_p8, %p1305_p5 }
  0x17   :  { %1315 = shalt.err (!%p1312_p9)
}
  0x18   :  { %24 = dma.hbm_to_vmem [thread:$0]  %s1443_s0, 896, %s22_s9, [#allocation3]  }
  0x19   :  { %s1324_s15 = scalar_lea.vmem %s45_s11, 2048  ;;  %p1329_p11 = scmp.lt.s32.totalorder %s45_s11, %s45_s11 }
  0x1a   :  { %p1325_p10 = scmp.ne.s32.totalorder %s45_s11, %s1324_s15  ;;  %p1330_p12 = scmp.lt.s32.totalorder %s1324_s15, %s1324_s15 }
  0x1c   :  { %p1331_p13 = por %p1330_p12, %p1329_p11 }
  0x1e   :  { %p1332_p0 = pnand %p1331_p13, %p1325_p10 }
  0x20   :  { %1335 = shalt.err (!%p1332_p0)
}
  0x21   :  { %s1367_s1 = smov 128   ;;  %s1368_s16 = smov 8  }
  0x22   :  { %50 = dma.hbm_to_vmem [thread:$0]  %s1446_s3, 2048, %s45_s11, [#allocation5], %s1367_s1, %s1367_s1, %s1368_s16  }
  0x23   :  { %s1369_s19 = smov [#allocation7]  }
  0x24   :  { %s58_s20 = sshll.u32 %s1369_s19, 4  ;;  %s59_s20 = int_to_ptr.vmem [resolvable:$true] %s58_s20 }
  0x25   :  { %s1344_s21 = scalar_lea.vmem %s59_s20, 2048  ;;  %p1349_p2 = scmp.lt.s32.totalorder %s59_s20, %s59_s20 }
  0x26   :  { %p1345_p1 = scmp.ne.s32.totalorder %s59_s20, %s1344_s21  ;;  %p1350_p3 = scmp.lt.s32.totalorder %s1344_s21, %s1344_s21 }
  0x28   :  { %p1351_p4 = por %p1350_p3, %p1349_p2 }
  0x2a   :  { %p1352_p5 = pnand %p1351_p4, %p1345_p1 }
  0x2c   :  { %1355 = shalt.err (!%p1352_p5)
}
  0x2d   :  { %64 = dma.hbm_to_vmem [thread:$0]  %s1448_s5, 2048, %s59_s20, [#allocation8], %s1363_s27, %s1363_s27, %s1364_s28  }
  0x2e   :  { %1356 = dma.done.wait [#allocation3], 896  }
  0x2f   :  { %1357 = vsyncadd [#allocation3], 4294966400 }
  0x30   :  { %1358 = dma.done.wait [#allocation5], 8320  }
  0x31   :  { %1359 = vsyncadd [#allocation5], 4294958976 }
  0x32   :  { %1360 = dma.done.wait [#allocation8], 2048  }
  0x33   :  { %1361 = vsyncadd [#allocation8], 4294965248  ;;  %v1187_v0 = vld [vmem:[#allocation4 + $0x78] sm:$0xff]   ;;  %v1191_v4 = vld [vmem:[#allocation4 + $0x70] sm:$0xff]   ;;  %v1370_v44 = vmov 0.0   ;;  %vm1371_vm0 = vmmov 0  }
  0x34   :  { %v1188_v1 = vld [vmem:[#allocation4 + $0x38] sm:$0xff]   ;;  %1080 = vmatprep.subr.bf16.mxu0 %v1187_v0  ;;  %v1192_v5 = vld [vmem:[#allocation4 + $0x30] sm:$0xff]   ;;  %v1195_v8 = vld [vmem:[#allocation4 + $0x68] sm:$0xff]   ;;  %vm495_vm1 = vcmask 130048  }
  0x35   :  { %v1189_v2 = vld [vmem:[#allocation4 + $0xf8] sm:$0xff]   ;;  %1081 = vmatpush3.bf16.msra.mxu0 %v1188_v1  ;;  %v1193_v6 = vld [vmem:[#allocation4 + $0xf0] sm:$0xff]   ;;  %v1196_v9 = vld [vmem:[#allocation4 + $0x28] sm:$0xff]  }
  0x36   :  { %v1190_v3 = vld [vmem:[#allocation4 + $0xb8] sm:$0xff]   ;;  %1102 = vmatprep.subr.bf16.mxu1 %v1189_v2  ;;  %1082 = vmatprep.subr.bf16.mxu0 %v1191_v4  ;;  %v1194_v7 = vld [vmem:[#allocation4 + $0xb0] sm:$0xff]   ;;  %v1197_v10 = vld [vmem:[#allocation4 + $0xe8] sm:$0xff]  }
  0x37   :  { %1103 = vmatpush3.bf16.msra.mxu1 %v1190_v3  ;;  %v1198_v11 = vld [vmem:[#allocation4 + $0xa8] sm:$0xff]   ;;  %v1199_v12 = vld [vmem:[#allocation4 + $0x60] sm:$0xff]   ;;  %v1203_v16 = vld [vmem:[#allocation4 + $0x58] sm:$0xff]  }
  0x38   :  { %1104 = vmatprep.subr.bf16.mxu1 %v1193_v6  ;;  %v1200_v13 = vld [vmem:[#allocation4 + $0x20] sm:$0xff]   ;;  %v1204_v17 = vld [vmem:[#allocation4 + $0x18] sm:$0xff]   ;;  %v1207_v20 = vld [vmem:[#allocation4 + $0x50] sm:$0xff]  }
  0x39   :  { %1083 = vmatpush3.bf16.msra.mxu0 %v1192_v5  ;;  %v1201_v14 = vld [vmem:[#allocation4 + $0xe0] sm:$0xff]   ;;  %v1205_v18 = vld [vmem:[#allocation4 + $0xd8] sm:$0xff]   ;;  %v1208_v21 = vld [vmem:[#allocation4 + $0x10] sm:$0xff]  }
  0x3a   :  { %1084 = vmatprep.subr.bf16.mxu0 %v1195_v8  ;;  %v1202_v15 = vld [vmem:[#allocation4 + $0xa0] sm:$0xff]   ;;  %v1206_v19 = vld [vmem:[#allocation4 + $0x98] sm:$0xff]   ;;  %v1209_v22 = vld [vmem:[#allocation4 + $0xd0] sm:$0xff]  }
  0x3b   :  { %1105 = vmatpush3.bf16.msra.mxu1 %v1194_v7  ;;  %v1210_v23 = vld [vmem:[#allocation4 + $0x90] sm:$0xff]   ;;  %v1211_v24 = vld [vmem:[#allocation4 + $0x48] sm:$0xff]   ;;  %v1215_v28 = vld [vmem:[#allocation4 + $0x40] sm:$0xff]  }
  0x3c   :  { %1106 = vmatprep.subr.bf16.mxu1 %v1197_v10  ;;  %v1212_v25 = vld [vmem:[#allocation4 + $0x8] sm:$0xff]   ;;  %v1216_v29 = vld [vmem:[#allocation4] sm:$0xff]   ;;  %v81_v31 = vld [vmem:[#allocation2 + $0x8] sm:$0xff] }
  0x3d   :  { %1085 = vmatpush3.bf16.msra.mxu0 %v1196_v9  ;;  %v1213_v26 = vld [vmem:[#allocation4 + $0xc8] sm:$0xff]   ;;  %v1217_v30 = vld [vmem:[#allocation4 + $0xc0] sm:$0xff]   ;;  %v88_v32 = vpack.c.bf16 %v81_v31, %v81_v31  ;;  %v1219_v36 = vld [vmem:[#allocation4 + $0x178] sm:$0xff]  }
  0x3e   :  { %1086 = vmatprep.subr.bf16.mxu0 %v1199_v12  ;;  %v1214_v27 = vld [vmem:[#allocation4 + $0x88] sm:$0xff]   ;;  %v1218_v33 = vld [vmem:[#allocation4 + $0x80] sm:$0xff]   ;;  %v1220_v39 = vld [vmem:[#allocation4 + $0x138] sm:$0xff]  }
  0x3f   :  { %1107 = vmatpush3.bf16.msra.mxu1 %v1198_v11  ;;  %v80_v34 = vld [vmem:[#allocation2] sm:$0xff]  ;;  %v83_v37 = vld [vmem:[#allocation2 + $0x18] sm:$0xff]  ;;  %531 = vmatprep.mubr.bf16.mxu0 %v88_v32  ;;  %v82_v40 = vld [vmem:[#allocation2 + $0x10] sm:$0xff] }
  0x40   :  { %1108 = vmatprep.subr.bf16.mxu1 %v1201_v14  ;;  %v87_v35 = vpack.c.bf16 %v80_v34, %v80_v34  ;;  %v90_v38 = vpack.c.bf16 %v83_v37, %v83_v37  ;;  %v89_v41 = vpack.c.bf16 %v82_v40, %v82_v40  ;;  %v1221_v42 = vld [vmem:[#allocation4 + $0x170] sm:$0xff]   ;;  %v1223_v45 = vld [vmem:[#allocation4 + $0x168] sm:$0xff]   ;;  %v1225_v47 = vld [vmem:[#allocation4 + $0x160] sm:$0xff]  }
  0x41   :  { %1087 = vmatpush3.bf16.msra.mxu0 %v1200_v13  ;;  %v1222_v43 = vld [vmem:[#allocation4 + $0x130] sm:$0xff]   ;;  %v1224_v46 = vld [vmem:[#allocation4 + $0x128] sm:$0xff]   ;;  %v1226_v48 = vld [vmem:[#allocation4 + $0x120] sm:$0xff]  }
  0x42   :  { %1088 = vmatprep.subr.bf16.mxu0 %v1203_v16  ;;  %571 = vmatprep.mubr.bf16.mxu1 %v90_v38  ;;  %v1227_v49 = vld [vmem:[#allocation4 + $0x158] sm:$0xff]   ;;  %v1229_v51 = vld [vmem:[#allocation4 + $0x150] sm:$0xff]   ;;  %v1235_v53 = vld [vmem:[#allocation4 + $0x180] sm:$0xff]   ;;  %v1372_v16 = vmov 0  }
  0x43   :  { %1109 = vmatpush3.bf16.msra.mxu1 %v1202_v15  ;;  %v1228_v50 = vld [vmem:[#allocation4 + $0x118] sm:$0xff]   ;;  %v1230_v52 = vld [vmem:[#allocation4 + $0x110] sm:$0xff]   ;;  %v1231_v55 = vld [vmem:[#allocation4 + $0x148] sm:$0xff]  }
  0x44   :  { %1110 = vmatprep.subr.bf16.mxu1 %v1205_v18  ;;  %v85_v54 = vld [vmem:[#allocation2 + $0x28] sm:$0xff]  ;;  %v86_v57 = vld [vmem:[#allocation2 + $0x30] sm:$0xff]  ;;  %v1232_v59 = vld [vmem:[#allocation4 + $0x108] sm:$0xff]  }
  0x45   :  { %1089 = vmatpush3.bf16.msra.mxu0 %v1204_v17  ;;  %v92_v56 = vpack.c.bf16 %v85_v54, %v85_v54  ;;  %v93_v58 = vpack.c.bf16 %v86_v57, %v86_v57  ;;  %v1233_v60 = vld [vmem:[#allocation4 + $0x140] sm:$0xff]   ;;  %v84_v62 = vld [vmem:[#allocation2 + $0x20] sm:$0xff] }
  0x46   :  { %1090 = vmatprep.subr.bf16.mxu0 %v1207_v20  ;;  %v1234_v61 = vld [vmem:[#allocation4 + $0x100] sm:$0xff]   ;;  %v91_v63 = vpack.c.bf16 %v84_v62, %v84_v62  ;;  %v1241_v2 = vld [vmem:[#allocation6 + $0x64] ss:$8 sps:$4 sm:$0xff]   ;;  %v1239_v3 = vld [vmem:[#allocation6 + $0x60] ss:$8 sps:$4 sm:$0xff]  }
  0x47   :  { %1111 = vmatpush3.bf16.msra.mxu1 %v1206_v19  ;;  %v1236_v0 = vld [vmem:[#allocation6 + $0x70] ss:$8 sps:$4 sm:$0xff]   ;;  %v1238_v1 = vld [vmem:[#allocation6 + $0x74] ss:$8 sps:$4 sm:$0xff]   ;;  %v1247_v6 = vld [vmem:[#allocation6 + $0x44] ss:$8 sps:$4 sm:$0xff]  }
  0x48   :  { %1112 = vmatprep.subr.bf16.mxu1 %v1209_v22  ;;  %v1244_v4 = vld [vmem:[#allocation6 + $0x54] ss:$8 sps:$4 sm:$0xff]   ;;  %v1242_v5 = vld [vmem:[#allocation6 + $0x50] ss:$8 sps:$4 sm:$0xff]   ;;  %v1245_v7 = vld [vmem:[#allocation6 + $0x40] ss:$8 sps:$4 sm:$0xff]  }
  0x49   :  { %1091 = vmatpush3.bf16.msra.mxu0 %v1208_v21  ;;  %v1250_v8 = vld [vmem:[#allocation6 + $0x34] ss:$8 sps:$4 sm:$0xff]   ;;  %v1248_v9 = vld [vmem:[#allocation6 + $0x30] ss:$8 sps:$4 sm:$0xff]   ;;  %v1251_v10 = vld [vmem:[#allocation6 + $0x20] ss:$8 sps:$4 sm:$0xff]  }
  0x4a   :  { %1092 = vmatprep.subr.bf16.mxu0 %v1211_v24  ;;  %v1253_v11 = vld [vmem:[#allocation6 + $0x24] ss:$8 sps:$4 sm:$0xff]   ;;  %v1256_v12 = vld [vmem:[#allocation6 + $0x14] ss:$8 sps:$4 sm:$0xff]   ;;  %v1254_v13 = vld [vmem:[#allocation6 + $0x10] ss:$8 sps:$4 sm:$0xff]  }
  0x4b   :  { %1113 = vmatpush3.bf16.msra.mxu1 %v1210_v23  ;;  %v1259_v14 = vld [vmem:[#allocation6 + $0x4] ss:$8 sps:$4 sm:$0xff]   ;;  %v1257_v15 = vld [vmem:[#allocation6] ss:$8 sps:$4 sm:$0xff]   ;;  %v1260_v17 = vld [vmem:[#allocation7 + $0x78] sm:$0xff]  }
  0x4c   :  { %1114 = vmatprep.subr.bf16.mxu1 %v1213_v26  ;;  %v1261_v18 = vld [vmem:[#allocation7 + $0x38] sm:$0xff]   ;;  %v1262_v19 = vld [vmem:[#allocation7 + $0x70] sm:$0xff]   ;;  %v1264_v21 = vld [vmem:[#allocation7 + $0x68] sm:$0xff]  }
  0x4d   :  { %1093 = vmatpush3.bf16.msra.mxu0 %v1212_v25  ;;  %v1263_v20 = vld [vmem:[#allocation7 + $0x30] sm:$0xff]   ;;  %v1265_v22 = vld [vmem:[#allocation7 + $0x28] sm:$0xff]   ;;  %v1266_v23 = vld [vmem:[#allocation7 + $0x60] sm:$0xff]  }
  0x4e   :  { %1094 = vmatprep.subr.bf16.mxu0 %v1215_v28  ;;  %v1267_v24 = vld [vmem:[#allocation7 + $0x20] sm:$0xff]   ;;  %v1268_v25 = vld [vmem:[#allocation7 + $0x58] sm:$0xff]   ;;  %v1271_v28 = vld [vmem:[#allocation7 + $0x10] sm:$0xff]  }
  0x4f   :  { %1115 = vmatpush3.bf16.msra.mxu1 %v1214_v27  ;;  %v1269_v26 = vld [vmem:[#allocation7 + $0x18] sm:$0xff]   ;;  %v1270_v27 = vld [vmem:[#allocation7 + $0x50] sm:$0xff]   ;;  %v1274_v57 = vld [vmem:[#allocation7 + $0x40] sm:$0xff]  }
  0x50   :  { %1116 = vmatprep.subr.bf16.mxu1 %v1217_v30  ;;  %v95_v62 = vld [vmem:[%s1447_s4] sm:$0x3] }
  0x51   :  { %1095 = vmatpush3.bf16.msra.mxu0 %v1216_v29 }
  0x52   :  { %1124 = vmatprep.subr.bf16.mxu0 %v1219_v36 }
  0x53   :  { %1117 = vmatpush3.bf16.msra.mxu1 %v1218_v33 }
  0x54   :  { %532 = vmatmul.mubr.bf16.vlgmr.msra.gmra.mxu0 %v87_v35  ;;  %1170 = vmatprep.subr.bf16.mxu1 %v1370_v44 }
  0x55   :  { %1125 = vmatpush3.bf16.msra.mxu0 %v1220_v39  ;;  %611 = vmatprep.mubr.bf16.mxu0 %v92_v56  ;;  %v1273_v56 = vld [vmem:[#allocation7 + $0x8] sm:$0xff]  }
  0x56   :  { %572 = vmatmul.mubr.bf16.vlgmr.msra.gmra.mxu1 %v89_v41  ;;  %1126 = vmatprep.subr.bf16.mxu0 %v1221_v42  ;;  %v996_v42 = vld [vmem:[%s1445_s2] ss:$0 sm:$0xff] }
  0x57   :  { %1172 = vmatprep.mubr.msk.bf16.mxu1 %vm1371_vm0, %v1370_v44  ;;  %1171 = vmatpush3.bf16.msra.mxu1 %v1235_v53 }
  0x58   :  { %768 = vmatprep.subr.bf16.mxu1 %v1238_v1 }
  0x59   :  { %1127 = vmatpush3.bf16.msra.mxu0 %v1222_v43 }
  0x5a   :  { %1128 = vmatprep.subr.bf16.mxu0 %v1223_v45 }
  0x5d   :  { %1129 = vmatpush3.bf16.msra.mxu0 %v1224_v46 }
  0x5e   :  { %1130 = vmatprep.subr.bf16.mxu0 %v1225_v47  ;;  %1173 = vmatmul.mubr.msk.bf16.vlgmr.msra.gmra.mxu1 %vm495_vm1, %v93_v58  ;;  %v1275_v58 = vld [vmem:[#allocation7] sm:$0xff]  }
  0x5f   :  { %769 = vmatpush1.bf16.msra.mxu1 %v1236_v0  ;;  %800 = vmatprep.mubr.bf16.mxu1 %v1372_v16 }
  0x60   :  { %770 = vmatprep.subr.bf16.mxu1 %v1241_v2 }
  0x61   :  { %1131 = vmatpush3.bf16.msra.mxu0 %v1226_v48 }
  0x62   :  { %1132 = vmatprep.subr.bf16.mxu0 %v1227_v49 }
  0x63   :  { %771 = vmatpush1.bf16.msra.mxu1 %v1239_v3 }
  0x64   :  { %772 = vmatprep.subr.bf16.mxu1 %v1244_v4 }
  0x65   :  { %1133 = vmatpush3.bf16.msra.mxu0 %v1228_v50 }
  0x66   :  { %1134 = vmatprep.subr.bf16.mxu0 %v1229_v51 }
  0x67   :  { %773 = vmatpush1.bf16.msra.mxu1 %v1242_v5 }
  0x68   :  { %774 = vmatprep.subr.bf16.mxu1 %v1247_v6 }
  0x69   :  { %1135 = vmatpush3.bf16.msra.mxu0 %v1230_v52 }
  0x6a   :  { %1136 = vmatprep.subr.bf16.mxu0 %v1231_v55  ;;  %v1272_v55 = vld [vmem:[#allocation7 + $0x48] sm:$0xff]  }
  0x6b   :  { %775 = vmatpush1.bf16.msra.mxu1 %v1245_v7 }
  0x6c   :  { %776 = vmatprep.subr.bf16.mxu1 %v1250_v8 }
  0x6d   :  { %1137 = vmatpush3.bf16.msra.mxu0 %v1232_v59  ;;  %v678_v59 = vlaneseq }
  0x6e   :  { %1138 = vmatprep.subr.bf16.mxu0 %v1233_v60 }
  0x6f   :  { %777 = vmatpush1.bf16.msra.mxu1 %v1248_v9  ;;  %v679_v60 = vshrl.u32 %v678_v59, 7 }
  0x70   :  { %778 = vmatprep.subr.bf16.mxu1 %v1253_v11 }
  0x71   :  { %1139 = vmatpush3.bf16.msra.mxu0 %v1234_v61  ;;  %v680_v61 = vsub.s32 0, %v679_v60 }
  0x72   :  { %1148 = vmatprep.subr.bf16.mxu0 %v1260_v17 }
  0x73   :  { %779 = vmatpush1.bf16.msra.mxu1 %v1251_v10  ;;  %v681_v0 = vrot.slane %v95_v62, %v680_v61 }
  0x74   :  { %612 = vmatmul.mubr.bf16.vlgmr.msra.gmra.mxu0 %v91_v63  ;;  %780 = vmatprep.subr.bf16.mxu1 %v1256_v12  ;;  %v684_v63 = vsub.s32 1, %v679_v60 }
  0x75   :  { %1149 = vmatpush3.bf16.msra.mxu0 %v1261_v18 }
  0x76   :  { %1150 = vmatprep.subr.bf16.mxu0 %v1262_v19  ;;  %v685_v1 = vrot.slane %v95_v62, %v684_v63 }
  0x77   :  { %781 = vmatpush1.bf16.msra.mxu1 %v1254_v13  ;;  %v1063_v13 = vld [vmem:[%s1449_s6] ss:$0 sm:$0xff] }
  0x78   :  { %782 = vmatprep.subr.bf16.mxu1 %v1259_v14 }
  0x79   :  { %1151 = vmatpush3.bf16.msra.mxu0 %v1263_v20 }
  0x7a   :  { %1152 = vmatprep.subr.bf16.mxu0 %v1264_v21 }
  0x7b   :  { %783 = vmatpush1.bf16.msra.mxu1 %v1257_v15 }
  0x7d   :  { %1153 = vmatpush3.bf16.msra.mxu0 %v1265_v22 }
  0x7e   :  { %1154 = vmatprep.subr.bf16.mxu0 %v1266_v23 }
  0x81   :  { %1155 = vmatpush3.bf16.msra.mxu0 %v1267_v24 }
  0x82   :  { %1156 = vmatprep.subr.bf16.mxu0 %v1268_v25 }
  0x85   :  { %1157 = vmatpush3.bf16.msra.mxu0 %v1269_v26 }
  0x86   :  { %1158 = vmatprep.subr.bf16.mxu0 %v1270_v27 }
  0x89   :  { %1159 = vmatpush3.bf16.msra.mxu0 %v1271_v28 }
  0x8a   :  { %1160 = vmatprep.subr.bf16.mxu0 %v1272_v55 }
  0x8d   :  { %1161 = vmatpush3.bf16.msra.mxu0 %v1273_v56 }
  0x8e   :  { %1162 = vmatprep.subr.bf16.mxu0 %v1274_v57 }
  0x91   :  { %1163 = vmatpush3.bf16.msra.mxu0 %v1275_v58 }
 0x114   :  { %v1096_v29 = vpop.f32.mrf.mxu0 }
 0x116   :  { %v1097_v30 = vpop.f32.mrf.mxu0  ;;  %v1118_v31 = vpop.f32.mrf.mxu1 }
 0x117   :  { %v1098_v41 = vadd.f32 %v1097_v30, %v1096_v29 }
 0x118   :  { %v1099_v32 = vpop.f32.mrf.mxu0  ;;  %v1119_v33 = vpop.f32.mrf.mxu1 }
 0x119   :  { %v534_v43 = vadd.f32 %v1098_v41, %v996_v42  ;;  %v1120_v44 = vadd.f32 %v1119_v33, %v1118_v31 }
 0x11a   :  { %v1100_v34 = vpop.f32.mrf.mxu0  ;;  %v1121_v35 = vpop.f32.mrf.mxu1 }
 0x11b   :  { %v574_v47 = vadd.f32 %v1120_v44, %v534_v43 }
 0x11c   :  { %v1122_v36 = vpop.f32.mrf.mxu1 }
 0x11e   :  { %v653_v37 = vpop.f32.mrf.mxu1 }
 0x120   :  { %v1174_v38 = vpop.f32.mrf.mxu1 }
 0x122   :  { %v656_v39 = vpop.f32.mrf.mxu1 }
 0x124   :  { %v1175_v40 = vpop.f32.mrf.mxu1 }
 0x134   :  { %v1140_v45 = vpop.f32.mrf.mxu0 }
 0x136   :  { %v1141_v46 = vpop.f32.mrf.mxu0 }
 0x137   :  { %v1142_v48 = vadd.f32 %v1141_v46, %v1140_v45 }
 0x138   :  { %v1143_v49 = vpop.f32.mrf.mxu0 }
 0x139   :  { %v614_v50 = vadd.f32 %v1142_v48, %v574_v47 }
 0x13a   :  { %v1144_v51 = vpop.f32.mrf.mxu0 }
 0x13b   :  { %v654_v52 = vadd.f32 %v653_v37, %v614_v50 }
 0x13d   :  { %v659_v53 = vmax.f32 %v654_v52, 0.0 }
 0x13f   :  { %v660_v54 = vpack.c.bf16 %v659_v53, %v659_v53 }
 0x141   :  { %801 = vmatmul.mubr.bf16.vlgmr.msra.gmra.mxu1 %v660_v54 }
 0x201   :  { %v802_v2 = vpop.f32.mrf.mxu1 }
 0x202   :  { %v803_v3 = vadd.f32 %v802_v2, %v681_v0 }
 0x203   :  { %v804_v4 = vpop.f32.mrf.mxu1 }
 0x204   :  { %v805_v5 = vadd.f32 %v804_v4, %v685_v1  ;;  %v809_v6 = vmax.f32 %v803_v3, 0.0 }
 0x205   :  { %v806_v7 = vpop.f32.mrf.mxu1 }
 0x206   :  { %v810_v8 = vmax.f32 %v805_v5, 0.0  ;;  %v811_v11 = vpack.c.bf16 %v809_v6, %v809_v6 }
 0x207   :  { %v807_v9 = vpop.f32.mrf.mxu1 }
 0x208   :  { %v812_v10 = vpack.c.bf16 %v810_v8, %v810_v8 }
 0x20a   :  { %979 = vmatprep.mubr.bf16.mxu0 %v812_v10 }
 0x20b   :  { %980 = vmatmul.mubr.bf16.vlgmr.msra.gmra.mxu0 %v811_v11 }
 0x2cb   :  { %v1164_v12 = vpop.f32.mrf.mxu0 }
 0x2cd   :  { %v1165_v14 = vpop.f32.mrf.mxu0 }
 0x2ce   :  { %v1166_v15 = vadd.f32 %v1165_v14, %v1164_v12 }
 0x2cf   :  { %v1167_v16 = vpop.f32.mrf.mxu0 }
 0x2d0   :  { %v982_v17 = vadd.f32 %v1166_v15, %v1063_v13 }
 0x2d1   :  { %v1168_v18 = vpop.f32.mrf.mxu0 }
 0x2d2   :  { %v987_v19 = vpack.c.bf16 %v982_v17, %v982_v17 }
 0x2d4   :  { %988 = vst [vmem:[%s1450_s7] sm:$0xf] %v987_v19 }
 0x2d5   :  { %993 = vsyncpa [#allocation3], 1 }
 0x2d6   :  { %994 = vsyncpa [#allocation5], 1 }
 0x2d7   :  { %995 = vsyncpa [#allocation8], 1 }

</bundles_post_ra>
